<compile_context>
chip_gen: v7x
topology: tpu7x:2x2x1
jax: 0.10.0
libtpu: 0.0.40
codegen_flags: <defaults>
</compile_context>

<pallas_src>
import functools

import jax
import jax.numpy as jnp
from jax import lax
from jax.experimental import pallas as pl
from jax.experimental.pallas import tpu as pltpu

BN_EPS = 1e-5
LANE = 128
LP = 8       # leading halo on the (length-)padded input, keeps reads aligned
HLEAD = 8    # leading halo on the staged h, keeps the big store aligned


def _round_up(x, m):
    return (x + m - 1) // m * m


def _vmem_spec():
    return pl.BlockSpec(memory_space=pltpu.MemorySpace.VMEM)


# ---------------------------------------------------------------------------
# Fused ResidualBlock1d kernel.
#   x_ref  : identity block          -> (N, Ltot, Cin_p) f32
#            downsample, stride 1    -> (N, Ltot, Cin_p) bf16
#            downsample, stride 2    -> (2, N, Lh, Cin_p) bf16 (phase split)
#   w*_ref : (K, Cin_p, Cp) bf16     per-tap conv weights (bias dropped: BN
#                                    training-mode mean subtraction cancels it)
#   v*_ref : (2, Cp) f32             rows = [BN gamma, BN beta]
#   o_ref  : (N*Lout, Cp)            lane-dense output
#   xbf_ref: (N, Ltot, Cin_p) bf16   scratch (identity blocks only)
#   h_ref  : (N, Htot, Cp) bf16      scratch for the normalized conv1 output
# ---------------------------------------------------------------------------
def _residual_block_kernel(*refs, N, Lout, K, stride, pad, has_ds):
    if has_ds:
        x_ref, w1_ref, v1_ref, w2_ref, v2_ref, wd_ref, vd_ref, o_ref, h_ref = refs
        xbf_ref = None
    else:
        x_ref, w1_ref, v1_ref, w2_ref, v2_ref, o_ref, xbf_ref, h_ref = refs
        wd_ref = vd_ref = None

    M = N * Lout
    cp = o_ref.shape[-1]
    inv_m = 1.0 / M

    # One-time bf16 cast of the f32 input (identity blocks only); downsample
    # blocks already receive a bf16 input from the glue.
    if not has_ds:
        xbf_ref[...] = x_ref[...].astype(jnp.bfloat16)

    def conv_from_x(w_ref, taps, off0):
        """Conv1d over the LP-padded input as shift-and-accumulate MXU matmuls.

        All tap starts are static Python ints; stride-2 blocks read contiguous
        sublane ranges from the phase-split layout (no strided loads).
        """
        acc = None
        for k in range(taps):
            a = off0 + k
            if stride == 1:
                src = x_ref if has_ds else xbf_ref
                tap = src[:, a:a + Lout, :]
            else:
                # x_ref[p, n, t, c] == x_padded[n, 2*t + p, c]
                tap = x_ref[a % 2, :, a // 2:a // 2 + Lout, :]
            part = jnp.dot(tap.reshape(M, tap.shape[-1]), w_ref[k],
                           preferred_element_type=jnp.float32)
            acc = part if acc is None else acc + part
        return acc

    def conv_from_h(w_ref):
        acc = None
        for k in range(K):
            tap = h_ref[:, HLEAD - pad + k:HLEAD - pad + k + Lout, :]
            part = jnp.dot(tap.reshape(M, cp), w_ref[k],
                           preferred_element_type=jnp.float32)
            acc = part if acc is None else acc + part
        return acc

    def bn(y, v_ref):
        """Training-mode BatchNorm1d, two-pass moments, folded scale/shift."""
        mean = jnp.sum(y, axis=0, keepdims=True) * inv_m
        c = y - mean
        var = jnp.sum(c * c, axis=0, keepdims=True) * inv_m
        inv_std = lax.rsqrt(var + BN_EPS)              # EUP, once per channel
        return c * (v_ref[0:1, :] * inv_std) + v_ref[1:2, :]

    # --- conv1 -> BN1 -> ReLU, staged bf16 with an implicit-zero halo --------
    y1 = conv_from_x(w1_ref, K, LP - pad)
    h = jnp.maximum(bn(y1, v1_ref), 0.0).astype(jnp.bfloat16)
    if pad > 0:
        halo = jnp.zeros((N, pad, cp), jnp.bfloat16)
        h_ref[:, HLEAD - pad:HLEAD, :] = halo
        h_ref[:, HLEAD + Lout:HLEAD + Lout + pad, :] = halo
    h_ref[:, HLEAD:HLEAD + Lout, :] = h.reshape(N, Lout, cp)   # aligned store

    # --- conv2 -> BN2 ---------------------------------------------------------
    y2 = bn(conv_from_h(w2_ref), v2_ref)

    # --- residual path: identity or fused downsample (1x1 conv + BN) ---------
    if has_ds:
        res = bn(conv_from_x(wd_ref, 1, LP), vd_ref)
    else:
        # identity residual stays in full f32 precision; aligned (offset LP=8)
        res = x_ref[:, LP:LP + Lout, :].reshape(M, cp)

    o_ref[...] = jnp.maximum(y2 + res, 0.0).astype(o_ref.dtype)


# ---------------------------------------------------------------------------
# Glue: layout / padding / parameter packing around the fused kernel.
# ---------------------------------------------------------------------------
def _pad_axis(a, axis, target):
    extra = target - a.shape[axis]
    if extra == 0:
        return a
    widths = [(0, 0)] * a.ndim
    widths[axis] = (0, extra)
    return jnp.pad(a, widths)


def _conv_weight(w_oik, cin_p, cout_p):
    """PyTorch (Cout, Cin, K) -> per-tap (K, Cin_p, Cout_p), bf16 for the MXU."""
    w = jnp.transpose(w_oik, (2, 1, 0))
    return _pad_axis(_pad_axis(w, 1, cin_p), 2, cout_p).astype(jnp.bfloat16)


def _bn_vec(gamma, beta, cout_p):
    """Rows = [BN gamma, BN beta], channel-padded with zeros (bias dropped)."""
    v = jnp.stack([gamma, beta], axis=0).astype(jnp.float32)
    return _pad_axis(v, 1, cout_p)


def residual_block_1d(x_ncl, blk):
    """ResidualBlock1d forward.  x_ncl: (N, C_in, L) f32 (PyTorch NCL layout)."""
    x_ncl = x_ncl.astype(jnp.float32)
    N, cin, L = x_ncl.shape
    cout, _, K = blk["conv1_w"].shape
    stride = int(blk["stride"])
    assert K % 2 == 1, "residual add requires odd kernel_size (same-length conv2)"
    assert stride in (1, 2), "only stride 1 / 2 supported"
    pad = (K - 1) // 2
    Lout = (L + 2 * pad - K) // stride + 1
    ds = blk.get("downsample")
    has_ds = ds is not None
    if not has_ds:
        assert stride == 1 and cin == cout, (
            "identity residual requires stride=1 and in_channels == out_channels")

    cin_p = _round_up(cin, LANE)
    cp = _round_up(cout, LANE)
    M = N * Lout

    # Channels-last input with conv1's length padding folded into an 8-row
    # leading halo (LP) so the identity-residual read starts sublane-aligned.
    x_nlc = jnp.transpose(x_ncl, (0, 2, 1))
    if stride == 1:
        Ltot = _round_up(LP + L + pad, 8)
        xflat = jnp.pad(x_nlc, ((0, 0), (LP, Ltot - LP - L), (0, cin_p - cin)))
        # Downsample blocks: bf16 input (halves the dominant HBM DMA); identity
        # blocks keep f32 for the residual and cast once in-kernel.
        x_in = xflat.astype(jnp.bfloat16) if has_ds else xflat
    else:
        Lh = _round_up(-(-(LP + L + pad) // 2), 8)
        Ltot = 2 * Lh
        xflat = jnp.pad(x_nlc, ((0, 0), (LP, Ltot - LP - L), (0, cin_p - cin)))
        # Phase split even/odd samples -> contiguous sublane reads per tap.
        x_in = jnp.transpose(
            xflat.reshape(N, Lh, 2, cin_p), (2, 0, 1, 3)).astype(jnp.bfloat16)

    inputs = [
        x_in,
        _conv_weight(blk["conv1_w"], cin_p, cp),
        _bn_vec(blk["bn1_gamma"], blk["bn1_beta"], cp),
        _conv_weight(blk["conv2_w"], cp, cp),
        _bn_vec(blk["bn2_gamma"], blk["bn2_beta"], cp),
    ]
    if has_ds:
        inputs += [
            _conv_weight(ds["conv_w"], cin_p, cp),
            _bn_vec(ds["bn_gamma"], ds["bn_beta"], cp),
        ]

    Htot = _round_up(HLEAD + Lout + pad, 8)
    scratch = []
    if not has_ds:
        scratch.append(pltpu.VMEM((N, Ltot, cin_p), jnp.bfloat16))  # bf16 input
    scratch.append(pltpu.VMEM((N, Htot, cp), jnp.bfloat16))         # staged h

    # Generation-aware VMEM budget (v5e/v6e: 128 MiB, v7x: 64 MiB per TC).
    bytes_in = sum(int(a.size) * a.dtype.itemsize for a in inputs)
    bytes_out = M * cp * 4
    bytes_scratch = N * Htot * cp * 2 + (0 if has_ds else N * Ltot * cin_p * 2)
    bytes_tmp = 8 * M * cp * 4        # conservative in-flight f32 intermediates
    vmem_need = bytes_in + bytes_out + bytes_scratch + bytes_tmp
    try:
        vmem_cap = int(pltpu.get_tpu_info().vmem_capacity_bytes)
    except Exception:
        vmem_cap = 64 * 2**20         # conservative (v7x per-TC) fallback
    if vmem_need > int(0.85 * vmem_cap):
        # TODO(synk): M-tiled grid + cross-tile two-pass BN stats (and
        # dimension_semantics=("parallel",) to use both v7x TensorCores) so
        # large N*L inputs don't need to be VMEM-resident.
        raise ValueError(
            f"block too large for the VMEM-resident kernel "
            f"({vmem_need / 2**20:.1f} MiB of ~{vmem_cap / 2**20:.0f} MiB VMEM)")
    vmem_limit = int(min(vmem_cap, vmem_need + (8 << 20)))

    flops = 2 * M * K * (cin_p * cp + cp * cp) + 20 * M * cp
    if has_ds:
        flops += 2 * M * cin_p * cp

    kernel = functools.partial(
        _residual_block_kernel, N=N, Lout=Lout, K=K, stride=stride,
        pad=pad, has_ds=has_ds)

    out = pl.pallas_call(
        kernel,
        out_shape=jax.ShapeDtypeStruct((M, cp), jnp.float32),
        in_specs=[_vmem_spec()] * len(inputs),
        out_specs=_vmem_spec(),
        scratch_shapes=scratch,
        compiler_params=pltpu.CompilerParams(vmem_limit_bytes=vmem_limit),
        cost_estimate=pl.CostEstimate(
            flops=int(flops),
            transcendentals=int((3 if has_ds else 2) * cp),
            bytes_accessed=int(bytes_in + bytes_out)),
    )(*inputs)

    # Strip channel padding; back to PyTorch NCL layout.
    out = out.reshape(N, Lout, cp)[:, :, :cout]
    return jnp.transpose(out, (0, 2, 1))


# ---------------------------------------------------------------------------
# Pure-JAX reference (mirrors the kernel's bf16 matmul inputs, f32 BN math).
# ---------------------------------------------------------------------------
def _bf16_round(a):
    return a.astype(jnp.bfloat16).astype(jnp.float32)


def _ref_conv1d(x_ncl, w_oik, b, stride, padding):
    y = lax.conv_general_dilated(
        _bf16_round(x_ncl), _bf16_round(w_oik), window_strides=(stride,),
        padding=[(padding, padding)], dimension_numbers=("NCH", "OIH", "NCH"))
    return y + b[None, :, None]


def _ref_bn_train(y_ncl, gamma, beta):
    mean = jnp.mean(y_ncl, axis=(0, 2), keepdims=True)
    var = jnp.mean(jnp.square(y_ncl - mean), axis=(0, 2), keepdims=True)
    y = (y_ncl - mean) * lax.rsqrt(var + BN_EPS)
    return y * gamma[None, :, None] + beta[None, :, None]


def reference_residual_block(x_ncl, blk):
    K = blk["conv1_w"].shape[-1]
    pad = (K - 1) // 2
    stride = int(blk["stride"])
    h = _ref_conv1d(x_ncl, blk["conv1_w"], blk["conv1_b"], stride, pad)
    h = jnp.maximum(_ref_bn_train(h, blk["bn1_gamma"], blk["bn1_beta"]), 0.0)
    y = _ref_conv1d(h, blk["conv2_w"], blk["conv2_b"], 1, pad)
    y = _ref_bn_train(y, blk["bn2_gamma"], blk["bn2_beta"])
    ds = blk.get("downsample")
    if ds is None:
        r = x_ncl
    else:
        r = _ref_conv1d(x_ncl, ds["conv_w"], ds["conv_b"], stride, 0)
        r = _ref_bn_train(r, ds["bn_gamma"], ds["bn_beta"])
    return jnp.maximum(y + r, 0.0)


# ---------------------------------------------------------------------------
# Deterministic parameter construction (freshly-constructed PyTorch module:
# BN gamma=1, beta=0, training mode; conv weights/bias ~ U(-1/sqrt(fan_in), ...)).
# ---------------------------------------------------------------------------
def init_residual_block(key, cin, cout, kernel_size, *, stride, with_downsample):
    k1, k2, k3 = jax.random.split(key, 3)

    def conv_params(k, ci, co, ksz):
        bound = 1.0 / float(ci * ksz) ** 0.5
        kw, kb = jax.random.split(k)
        w = jax.random.uniform(kw, (co, ci, ksz), jnp.float32, -bound, bound)
        b = jax.random.uniform(kb, (co,), jnp.float32, -bound, bound)
        return w, b

    w1, b1 = conv_params(k1, cin, cout, kernel_size)
    w2, b2 = conv_params(k2, cout, cout, kernel_size)
    blk = {
        "stride": stride,
        "conv1_w": w1, "conv1_b": b1,
        "bn1_gamma": jnp.ones((cout,), jnp.float32),
        "bn1_beta": jnp.zeros((cout,), jnp.float32),
        "conv2_w": w2, "conv2_b": b2,
        "bn2_gamma": jnp.ones((cout,), jnp.float32),
        "bn2_beta": jnp.zeros((cout,), jnp.float32),
        "downsample": None,
    }
    if with_downsample:
        # Standard ResNet downsample: Conv1d(kernel=1, stride) + BatchNorm1d.
        wd, bd = conv_params(k3, cin, cout, 1)
        blk["downsample"] = {
            "conv_w": wd, "conv_b": bd,
            "bn_gamma": jnp.ones((cout,), jnp.float32),
            "bn_beta": jnp.zeros((cout,), jnp.float32),
        }
    return blk


if __name__ == "__main__":
    key = jax.random.PRNGKey(0)
    kx, ka, kb, kc = jax.random.split(key, 4)

    N, C_IN, L, K = 2, 4, 16, 3
    x = jax.random.normal(kx, (N, C_IN, L), jnp.float32)   # PyTorch (N, C, L)

    # Block A: identity residual (stride=1, in_channels == out_channels).
    blk_a = init_residual_block(ka, C_IN, C_IN, K, stride=1, with_downsample=False)
    # Block B: stride-2, channel-expanding block with a conv1x1+BN downsample.
    blk_b = init_residual_block(kb, C_IN, 8, K, stride=2, with_downsample=True)
    # Block C: stride-1, channel-expanding block with a conv1x1+BN downsample.
    blk_c = init_residual_block(kc, C_IN, 8, K, stride=1, with_downsample=True)

    ya = residual_block_1d(x, blk_a)
    yb = residual_block_1d(x, blk_b)
    yc = residual_block_1d(x, blk_c)
    jax.block_until_ready((ya, yb, yc))

    assert ya.shape == (N, C_IN, L), ya.shape
    assert yb.shape == (N, 8, (L + 2 - K) // 2 + 1), yb.shape
    assert yc.shape == (N, 8, L), yc.shape

    ref_a = reference_residual_block(x, blk_a)
    ref_b = reference_residual_block(x, blk_b)
    ref_c = reference_residual_block(x, blk_c)
    err_a = float(jnp.max(jnp.abs(ya - ref_a)))
    err_b = float(jnp.max(jnp.abs(yb - ref_b)))
    err_c = float(jnp.max(jnp.abs(yc - ref_c)))
    assert err_a < 1e-2 and err_b < 1e-2 and err_c < 1e-2, (err_a, err_b, err_c)
    assert (bool(jnp.all(jnp.isfinite(ya))) and bool(jnp.all(jnp.isfinite(yb)))
            and bool(jnp.all(jnp.isfinite(yc))))

    print("KERNEL_OK")
</pallas_src>

<mosaic_0001>
module attributes {stable_mosaic.version = 11 : i64} {
  func.func @_residual_block_kernel(%arg0: memref<2x32x128xf32, #tpu.memory_space<vmem>>, %arg1: memref<3x128x128xbf16, #tpu.memory_space<vmem>>, %arg2: memref<2x128xf32, #tpu.memory_space<vmem>>, %arg3: memref<3x128x128xbf16, #tpu.memory_space<vmem>>, %arg4: memref<2x128xf32, #tpu.memory_space<vmem>>, %arg5: memref<32x128xf32, #tpu.memory_space<vmem>>, %arg6: memref<2x32x128xbf16, #tpu.memory_space<vmem>>, %arg7: memref<2x32x128xbf16, #tpu.memory_space<vmem>>) attributes {dimension_semantics = [], scalar_prefetch = 0 : i64, scratch_operands = 2 : i64, tpu.core_type = #tpu.core_type<tc>} {
    %c0 = arith.constant 0 : index
    %c0_0 = arith.constant 0 : index
    %c0_1 = arith.constant 0 : index
    %0 = vector.load %arg0[%c0, %c0_0, %c0_1] : memref<2x32x128xf32, #tpu.memory_space<vmem>>, vector<2x32x128xf32>
    %1 = arith.truncf %0 : vector<2x32x128xf32> to vector<2x32x128xbf16>
    %c0_2 = arith.constant 0 : index
    %c0_3 = arith.constant 0 : index
    %c0_4 = arith.constant 0 : index
    %2 = vector.load %arg6[%c0_2, %c0_3, %c0_4] : memref<2x32x128xbf16, #tpu.memory_space<vmem>>, vector<2x32x128xbf16>
    tpu.vector_store %arg6[%c0_2, %c0_3, %c0_4], %1 {strides = array<i32>} : memref<2x32x128xbf16, #tpu.memory_space<vmem>>, vector<2x32x128xbf16>,
    %c0_5 = arith.constant 0 : index
    %c7 = arith.constant 7 : index
    %c0_6 = arith.constant 0 : index
    %3 = vector.load %arg6[%c0_5, %c7, %c0_6] : memref<2x32x128xbf16, #tpu.memory_space<vmem>>, vector<2x16x128xbf16>
    %4 = vector.shape_cast %3 : vector<2x16x128xbf16> to vector<32x128xbf16>
    %c0_7 = arith.constant 0 : index
    %c0_8 = arith.constant 0 : index
    %c0_9 = arith.constant 0 : index
    %5 = vector.load %arg1[%c0_7, %c0_8, %c0_9] : memref<3x128x128xbf16, #tpu.memory_space<vmem>>, vector<1x128x128xbf16>
    %6 = vector.shape_cast %5 : vector<1x128x128xbf16> to vector<128x128xbf16>
    %cst = arith.constant dense<0.000000e+00> : vector<32x128xf32>
    %7 = tpu.matmul %4, %6, %cst {dimension_numbers = #tpu.dot_dimension_numbers<[1], [0], [0], [1], [0, 0, 1, 1], [], []>} : vector<32x128xbf16>, vector<128x128xbf16>, vector<32x128xf32> -> vector<32x128xf32>
    %c0_10 = arith.constant 0 : index
    %c8 = arith.constant 8 : index
    %c0_11 = arith.constant 0 : index
    %8 = vector.load %arg6[%c0_10, %c8, %c0_11] : memref<2x32x128xbf16, #tpu.memory_space<vmem>>, vector<2x16x128xbf16>
    %9 = vector.shape_cast %8 : vector<2x16x128xbf16> to vector<32x128xbf16>
    %c1 = arith.constant 1 : index
    %c0_12 = arith.constant 0 : index
    %c0_13 = arith.constant 0 : index
    %10 = vector.load %arg1[%c1, %c0_12, %c0_13] : memref<3x128x128xbf16, #tpu.memory_space<vmem>>, vector<1x128x128xbf16>
    %11 = vector.shape_cast %10 : vector<1x128x128xbf16> to vector<128x128xbf16>
    %cst_14 = arith.constant dense<0.000000e+00> : vector<32x128xf32>
    %12 = tpu.matmul %9, %11, %cst_14 {dimension_numbers = #tpu.dot_dimension_numbers<[1], [0], [0], [1], [0, 0, 1, 1], [], []>} : vector<32x128xbf16>, vector<128x128xbf16>, vector<32x128xf32> -> vector<32x128xf32>
    %13 = arith.addf %7, %12 : vector<32x128xf32>
    %c0_15 = arith.constant 0 : index
    %c9 = arith.constant 9 : index
    %c0_16 = arith.constant 0 : index
    %14 = vector.load %arg6[%c0_15, %c9, %c0_16] : memref<2x32x128xbf16, #tpu.memory_space<vmem>>, vector<2x16x128xbf16>
    %15 = vector.shape_cast %14 : vector<2x16x128xbf16> to vector<32x128xbf16>
    %c2 = arith.constant 2 : index
    %c0_17 = arith.constant 0 : index
    %c0_18 = arith.constant 0 : index
    %16 = vector.load %arg1[%c2, %c0_17, %c0_18] : memref<3x128x128xbf16, #tpu.memory_space<vmem>>, vector<1x128x128xbf16>
    %17 = vector.shape_cast %16 : vector<1x128x128xbf16> to vector<128x128xbf16>
    %cst_19 = arith.constant dense<0.000000e+00> : vector<32x128xf32>
    %18 = tpu.matmul %15, %17, %cst_19 {dimension_numbers = #tpu.dot_dimension_numbers<[1], [0], [0], [1], [0, 0, 1, 1], [], []>} : vector<32x128xbf16>, vector<128x128xbf16>, vector<32x128xf32> -> vector<32x128xf32>
    %19 = arith.addf %13, %18 : vector<32x128xf32>
    %cst_20 = arith.constant dense<0.000000e+00> : vector<128xf32>
    %20 = vector.multi_reduction <add>, %19, %cst_20 [0] : vector<32x128xf32> to vector<128xf32>
    %21 = vector.shape_cast %20 : vector<128xf32> to vector<1x128xf32>
    %cst_21 = arith.constant 3.125000e-02 : f32
    %22 = vector.broadcast %cst_21 : f32 to vector<1x128xf32>
    %23 = arith.mulf %21, %22 : vector<1x128xf32>
    %24 = vector.broadcast %23 : vector<1x128xf32> to vector<32x128xf32>
    %25 = arith.subf %19, %24 : vector<32x128xf32>
    %26 = arith.mulf %25, %25 : vector<32x128xf32>
    %cst_22 = arith.constant dense<0.000000e+00> : vector<128xf32>
    %27 = vector.multi_reduction <add>, %26, %cst_22 [0] : vector<32x128xf32> to vector<128xf32>
    %28 = vector.shape_cast %27 : vector<128xf32> to vector<1x128xf32>
    %cst_23 = arith.constant 3.125000e-02 : f32
    %29 = vector.broadcast %cst_23 : f32 to vector<1x128xf32>
    %30 = arith.mulf %28, %29 : vector<1x128xf32>
    %cst_24 = arith.constant 9.99999974E-6 : f32
    %31 = vector.broadcast %cst_24 : f32 to vector<1x128xf32>
    %32 = arith.addf %30, %31 : vector<1x128xf32>
    %33 = math.rsqrt %32 : vector<1x128xf32>
    %c0_25 = arith.constant 0 : index
    %c0_26 = arith.constant 0 : index
    %34 = vector.load %arg2[%c0_25, %c0_26] : memref<2x128xf32, #tpu.memory_space<vmem>>, vector<1x128xf32>
    %35 = arith.mulf %34, %33 : vector<1x128xf32>
    %36 = vector.broadcast %35 : vector<1x128xf32> to vector<32x128xf32>
    %37 = arith.mulf %25, %36 : vector<32x128xf32>
    %c1_27 = arith.constant 1 : index
    %c0_28 = arith.constant 0 : index
    %38 = vector.load %arg2[%c1_27, %c0_28] : memref<2x128xf32, #tpu.memory_space<vmem>>, vector<1x128xf32>
    %39 = vector.broadcast %38 : vector<1x128xf32> to vector<32x128xf32>
    %40 = arith.addf %37, %39 : vector<32x128xf32>
    %cst_29 = arith.constant 0.000000e+00 : f32
    %41 = vector.broadcast %cst_29 : f32 to vector<32x128xf32>
    %42 = arith.maximumf %40, %41 : vector<32x128xf32>
    %43 = arith.truncf %42 : vector<32x128xf32> to vector<32x128xbf16>
    %cst_30 = arith.constant 0.000000e+00 : bf16
    %44 = vector.broadcast %cst_30 : bf16 to vector<2x1x128xbf16>
    %c0_31 = arith.constant 0 : index
    %c7_32 = arith.constant 7 : index
    %c0_33 = arith.constant 0 : index
    %45 = vector.load %arg7[%c0_31, %c7_32, %c0_33] : memref<2x32x128xbf16, #tpu.memory_space<vmem>>, vector<2x1x128xbf16>
    tpu.vector_store %arg7[%c0_31, %c7_32, %c0_33], %44 {strides = array<i32>} : memref<2x32x128xbf16, #tpu.memory_space<vmem>>, vector<2x1x128xbf16>,
    %c0_34 = arith.constant 0 : index
    %c24 = arith.constant 24 : index
    %c0_35 = arith.constant 0 : index
    %46 = vector.load %arg7[%c0_34, %c24, %c0_35] : memref<2x32x128xbf16, #tpu.memory_space<vmem>>, vector<2x1x128xbf16>
    tpu.vector_store %arg7[%c0_34, %c24, %c0_35], %44 {strides = array<i32>} : memref<2x32x128xbf16, #tpu.memory_space<vmem>>, vector<2x1x128xbf16>,
    %47 = vector.shape_cast %43 : vector<32x128xbf16> to vector<2x16x128xbf16>
    %c0_36 = arith.constant 0 : index
    %c8_37 = arith.constant 8 : index
    %c0_38 = arith.constant 0 : index
    %48 = vector.load %arg7[%c0_36, %c8_37, %c0_38] : memref<2x32x128xbf16, #tpu.memory_space<vmem>>, vector<2x16x128xbf16>
    tpu.vector_store %arg7[%c0_36, %c8_37, %c0_38], %47 {strides = array<i32>} : memref<2x32x128xbf16, #tpu.memory_space<vmem>>, vector<2x16x128xbf16>,
    %c0_39 = arith.constant 0 : index
    %c7_40 = arith.constant 7 : index
    %c0_41 = arith.constant 0 : index
    %49 = vector.load %arg7[%c0_39, %c7_40, %c0_41] : memref<2x32x128xbf16, #tpu.memory_space<vmem>>, vector<2x16x128xbf16>
    %50 = vector.shape_cast %49 : vector<2x16x128xbf16> to vector<32x128xbf16>
    %c0_42 = arith.constant 0 : index
    %c0_43 = arith.constant 0 : index
    %c0_44 = arith.constant 0 : index
    %51 = vector.load %arg3[%c0_42, %c0_43, %c0_44] : memref<3x128x128xbf16, #tpu.memory_space<vmem>>, vector<1x128x128xbf16>
    %52 = vector.shape_cast %51 : vector<1x128x128xbf16> to vector<128x128xbf16>
    %cst_45 = arith.constant dense<0.000000e+00> : vector<32x128xf32>
    %53 = tpu.matmul %50, %52, %cst_45 {dimension_numbers = #tpu.dot_dimension_numbers<[1], [0], [0], [1], [0, 0, 1, 1], [], []>} : vector<32x128xbf16>, vector<128x128xbf16>, vector<32x128xf32> -> vector<32x128xf32>
    %c0_46 = arith.constant 0 : index
    %c8_47 = arith.constant 8 : index
    %c0_48 = arith.constant 0 : index
    %54 = vector.load %arg7[%c0_46, %c8_47, %c0_48] : memref<2x32x128xbf16, #tpu.memory_space<vmem>>, vector<2x16x128xbf16>
    %55 = vector.shape_cast %54 : vector<2x16x128xbf16> to vector<32x128xbf16>
    %c1_49 = arith.constant 1 : index
    %c0_50 = arith.constant 0 : index
    %c0_51 = arith.constant 0 : index
    %56 = vector.load %arg3[%c1_49, %c0_50, %c0_51] : memref<3x128x128xbf16, #tpu.memory_space<vmem>>, vector<1x128x128xbf16>
    %57 = vector.shape_cast %56 : vector<1x128x128xbf16> to vector<128x128xbf16>
    %cst_52 = arith.constant dense<0.000000e+00> : vector<32x128xf32>
    %58 = tpu.matmul %55, %57, %cst_52 {dimension_numbers = #tpu.dot_dimension_numbers<[1], [0], [0], [1], [0, 0, 1, 1], [], []>} : vector<32x128xbf16>, vector<128x128xbf16>, vector<32x128xf32> -> vector<32x128xf32>
    %59 = arith.addf %53, %58 : vector<32x128xf32>
    %c0_53 = arith.constant 0 : index
    %c9_54 = arith.constant 9 : index
    %c0_55 = arith.constant 0 : index
    %60 = vector.load %arg7[%c0_53, %c9_54, %c0_55] : memref<2x32x128xbf16, #tpu.memory_space<vmem>>, vector<2x16x128xbf16>
    %61 = vector.shape_cast %60 : vector<2x16x128xbf16> to vector<32x128xbf16>
    %c2_56 = arith.constant 2 : index
    %c0_57 = arith.constant 0 : index
    %c0_58 = arith.constant 0 : index
    %62 = vector.load %arg3[%c2_56, %c0_57, %c0_58] : memref<3x128x128xbf16, #tpu.memory_space<vmem>>, vector<1x128x128xbf16>
    %63 = vector.shape_cast %62 : vector<1x128x128xbf16> to vector<128x128xbf16>
    %cst_59 = arith.constant dense<0.000000e+00> : vector<32x128xf32>
    %64 = tpu.matmul %61, %63, %cst_59 {dimension_numbers = #tpu.dot_dimension_numbers<[1], [0], [0], [1], [0, 0, 1, 1], [], []>} : vector<32x128xbf16>, vector<128x128xbf16>, vector<32x128xf32> -> vector<32x128xf32>
    %65 = arith.addf %59, %64 : vector<32x128xf32>
    %cst_60 = arith.constant dense<0.000000e+00> : vector<128xf32>
    %66 = vector.multi_reduction <add>, %65, %cst_60 [0] : vector<32x128xf32> to vector<128xf32>
    %67 = vector.shape_cast %66 : vector<128xf32> to vector<1x128xf32>
    %cst_61 = arith.constant 3.125000e-02 : f32
    %68 = vector.broadcast %cst_61 : f32 to vector<1x128xf32>
    %69 = arith.mulf %67, %68 : vector<1x128xf32>
    %70 = vector.broadcast %69 : vector<1x128xf32> to vector<32x128xf32>
    %71 = arith.subf %65, %70 : vector<32x128xf32>
    %72 = arith.mulf %71, %71 : vector<32x128xf32>
    %cst_62 = arith.constant dense<0.000000e+00> : vector<128xf32>
    %73 = vector.multi_reduction <add>, %72, %cst_62 [0] : vector<32x128xf32> to vector<128xf32>
    %74 = vector.shape_cast %73 : vector<128xf32> to vector<1x128xf32>
    %cst_63 = arith.constant 3.125000e-02 : f32
    %75 = vector.broadcast %cst_63 : f32 to vector<1x128xf32>
    %76 = arith.mulf %74, %75 : vector<1x128xf32>
    %cst_64 = arith.constant 9.99999974E-6 : f32
    %77 = vector.broadcast %cst_64 : f32 to vector<1x128xf32>
    %78 = arith.addf %76, %77 : vector<1x128xf32>
    %79 = math.rsqrt %78 : vector<1x128xf32>
    %c0_65 = arith.constant 0 : index
    %c0_66 = arith.constant 0 : index
    %80 = vector.load %arg4[%c0_65, %c0_66] : memref<2x128xf32, #tpu.memory_space<vmem>>, vector<1x128xf32>
    %81 = arith.mulf %80, %79 : vector<1x128xf32>
    %82 = vector.broadcast %81 : vector<1x128xf32> to vector<32x128xf32>
    %83 = arith.mulf %71, %82 : vector<32x128xf32>
    %c1_67 = arith.constant 1 : index
    %c0_68 = arith.constant 0 : index
    %84 = vector.load %arg4[%c1_67, %c0_68] : memref<2x128xf32, #tpu.memory_space<vmem>>, vector<1x128xf32>
    %85 = vector.broadcast %84 : vector<1x128xf32> to vector<32x128xf32>
    %86 = arith.addf %83, %85 : vector<32x128xf32>
    %c0_69 = arith.constant 0 : index
    %c8_70 = arith.constant 8 : index
    %c0_71 = arith.constant 0 : index
    %87 = vector.load %arg0[%c0_69, %c8_70, %c0_71] : memref<2x32x128xf32, #tpu.memory_space<vmem>>, vector<2x16x128xf32>
    %88 = vector.shape_cast %87 : vector<2x16x128xf32> to vector<32x128xf32>
    %89 = arith.addf %86, %88 : vector<32x128xf32>
    %cst_72 = arith.constant 0.000000e+00 : f32
    %90 = vector.broadcast %cst_72 : f32 to vector<32x128xf32>
    %91 = arith.maximumf %89, %90 : vector<32x128xf32>
    %c0_73 = arith.constant 0 : index
    %c0_74 = arith.constant 0 : index
    %92 = vector.load %arg5[%c0_73, %c0_74] : memref<32x128xf32, #tpu.memory_space<vmem>>, vector<32x128xf32>
    tpu.vector_store %arg5[%c0_73, %c0_74], %91 {strides = array<i32>} : memref<32x128xf32, #tpu.memory_space<vmem>>, vector<32x128xf32>,
    return
  }
}

</mosaic_0001>

<bundles_post_ra>
// kernel: tpu_custom_call.1
= control target key start
LH: loop header
LB: loop body
LE: loop exit
PB: predicated region body
PF: predicated region fallthrough
CT: control target
= control target key end

     0   :  { %10 = vsyncpa [#allocation5], 0  ;;  %s1694_s0 = inlined_call_operand.hbm [shape: f32[2,32,128], index: 0, kind: input, shape index: {}]   ;;  %s1695_s1 = inlined_call_operand.hbm [shape: bf16[3,128,128], index: 1, kind: input, shape index: {}]   ;;  %s1696_s2 = inlined_call_operand.vmem [shape: f32[2,128], index: 2, kind: input, shape index: {}]   ;;  %s1697_s3 = inlined_call_operand.hbm [shape: bf16[3,128,128], index: 3, kind: input, shape index: {}]   ;;  %s1698_s4 = inlined_call_operand.vmem [shape: f32[2,128], index: 4, kind: input, shape index: {}]   ;;  %s1699_s5 = inlined_call_operand.hbm [shape: f32[32,128], index: 5, kind: output, shape index: {}]  }
   0x1   :  { %11 = vsyncpa [#allocation8], 0 }
   0x2   :  { %12 = vsyncpa [#allocation6], 0  ;;  %s1521_s18 = smov [#allocation7]   ;;  %s1427_s22 = scalar_lea.hbm %s1695_s1, 3072 }
   0x3   :  { %s30_s19 = sshll.u32 %s1521_s18, 4  ;;  %p1428_p0 = scmp.ne.s32.totalorder %s1695_s1, %s1427_s22  ;;  %s31_s19 = int_to_ptr.vmem [resolvable:$true] %s30_s19 }
   0x4   :  { %p1431_p1 = scmp.lt.u32.totalorder %s1427_s22, %s1695_s1 }
   0x6   :  { %p1433_p2 = pnand %p1431_p1, %p1428_p0 }
   0x8   :  { %1436 = shalt.err (!%p1433_p2)
}
   0x9   :  { %s1437_s27 = scalar_lea.vmem %s31_s19, 3072  ;;  %p1442_p4 = scmp.lt.s32.totalorder %s31_s19, %s31_s19 }
   0xa   :  { %p1438_p3 = scmp.ne.s32.totalorder %s31_s19, %s1437_s27  ;;  %p1443_p5 = scmp.lt.s32.totalorder %s1437_s27, %s1437_s27 }
   0xc   :  { %p1444_p6 = por %p1443_p5, %p1442_p4 }
   0xe   :  { %p1445_p7 = pnand %p1444_p6, %p1438_p3 }
  0x10   :  { %1448 = shalt.err (!%p1445_p7)
}
  0x11   :  { %s1522_s28 = smov 64   ;;  %s1523_s29 = smov 4  }
  0x12   :  { %36 = dma.hbm_to_vmem [thread:$0]  %s1695_s1, 3072, %s31_s19, [#allocation8], %s1522_s28, %s1522_s28, %s1523_s29  }
  0x13   :  { %s1524_s7 = smov [#allocation4]   ;;  %s1449_s11 = scalar_lea.hbm %s1694_s0, 1024 }
  0x14   :  { %s18_s8 = sshll.u32 %s1524_s7, 4  ;;  %p1450_p8 = scmp.ne.s32.totalorder %s1694_s0, %s1449_s11  ;;  %s19_s8 = int_to_ptr.vmem [resolvable:$true] %s18_s8 }
  0x15   :  { %p1453_p9 = scmp.lt.u32.totalorder %s1449_s11, %s1694_s0 }
  0x17   :  { %p1455_p10 = pnand %p1453_p9, %p1450_p8 }
  0x19   :  { %1458 = shalt.err (!%p1455_p10)
}
  0x1a   :  { %s1459_s16 = scalar_lea.vmem %s19_s8, 1024  ;;  %p1464_p12 = scmp.lt.s32.totalorder %s19_s8, %s19_s8 }
  0x1b   :  { %p1460_p11 = scmp.ne.s32.totalorder %s19_s8, %s1459_s16  ;;  %p1465_p13 = scmp.lt.s32.totalorder %s1459_s16, %s1459_s16 }
  0x1d   :  { %p1466_p0 = por %p1465_p13, %p1464_p12 }
  0x1f   :  { %p1467_p1 = pnand %p1466_p0, %p1460_p11 }
  0x21   :  { %1470 = shalt.err (!%p1467_p1)
}
  0x22   :  { %s1525_s1 = smov 128   ;;  %s1526_s17 = smov 8  }
  0x23   :  { %24 = dma.hbm_to_vmem [thread:$0]  %s1694_s0, 1024, %s19_s8, [#allocation5], %s1525_s1, %s1525_s1, %s1526_s17  }
  0x24   :  { %s1527_s20 = smov [#allocation9]   ;;  %s1471_s24 = scalar_lea.hbm %s1697_s3, 3072 }
  0x25   :  { %s44_s21 = sshll.u32 %s1527_s20, 4  ;;  %p1472_p2 = scmp.ne.s32.totalorder %s1697_s3, %s1471_s24  ;;  %s45_s21 = int_to_ptr.vmem [resolvable:$true] %s44_s21 }
  0x26   :  { %p1475_p3 = scmp.lt.u32.totalorder %s1471_s24, %s1697_s3 }
  0x28   :  { %p1477_p4 = pnand %p1475_p3, %p1472_p2 }
  0x2a   :  { %1480 = shalt.err (!%p1477_p4)
}
  0x2b   :  { %s1481_s6 = scalar_lea.vmem %s45_s21, 3072  ;;  %p1486_p6 = scmp.lt.s32.totalorder %s45_s21, %s45_s21 }
  0x2c   :  { %p1482_p5 = scmp.ne.s32.totalorder %s45_s21, %s1481_s6  ;;  %p1487_p7 = scmp.lt.s32.totalorder %s1481_s6, %s1481_s6 }
  0x2e   :  { %p1488_p8 = por %p1487_p7, %p1486_p6 }
  0x30   :  { %p1489_p9 = pnand %p1488_p8, %p1482_p5 }
  0x32   :  { %1492 = shalt.err (!%p1489_p9)
}
  0x33   :  { %50 = dma.hbm_to_vmem [thread:$0]  %s1697_s3, 3072, %s45_s21, [#allocation8], %s1522_s28, %s1522_s28, %s1523_s29  }
  0x34   :  { %1515 = dma.done.wait [#allocation5], 1024  }
  0x35   :  { %1516 = vsyncadd [#allocation5], 4294966272 }
  0x36   :  { %1517 = dma.done.wait [#allocation8], 6144  }
  0x37   :  { %1518 = vsyncadd [#allocation8], 4294961152  ;;  %v1375_v0 = vld [vmem:[#allocation7 + $0x40] sm:$0xff]   ;;  %v1376_v1 = vld [vmem:[#allocation7 + $0x48] sm:$0xff]   ;;  %vm583_vm0 = vcmask 1044484   ;;  %vm142_vm2 = vcmask 1043456  }
  0x38   :  { %1231 = vmatprep.subr.bf16.mxu0 %v1375_v0  ;;  %v1377_v2 = vld [vmem:[#allocation7 + $0x50] sm:$0xff]   ;;  %v1378_v3 = vld [vmem:[#allocation7 + $0x58] sm:$0xff]   ;;  %v63_v4 = vld [vmem:[#allocation4] sm:$0xff]  ;;  %vm83_vm1 = vsmask.f32 4352  ;;  %vm574_vm5 = vcmask 1043459  }
  0x39   :  { %1232 = vmatpush3.bf16.msra.mxu0 %v1375_v0  ;;  %v1604_v5 = vld [vmem:[#allocation4 + $0x8] sm:$0xff]  ;;  %v1606_v6 = vld [vmem:[#allocation4 + $0x10] sm:$0xff]  ;;  %v66_v7 = vld [vmem:[#allocation4 + $0x18] sm:$0xff]  ;;  %vm364_vm4 = vsmask.f32 3328  ;;  %s1528_s12 = smov [#allocation10]  }
  0x3a   :  { %1233 = vmatprep.subr.bf16.mxu0 %v1376_v1  ;;  %v71_v8 = vpack.c.bf16 %v1604_v5, %v63_v4  ;;  %v72_v9 = vpack.c.bf16 %v66_v7, %v1606_v6  ;;  %v67_v10 = vld [vmem:[#allocation4 + $0x20] sm:$0xff]  ;;  %v1610_v11 = vld [vmem:[#allocation4 + $0x28] sm:$0xff]  ;;  %v1612_v12 = vld [vmem:[#allocation4 + $0x30] sm:$0xff]  ;;  %vm575_vm6 = vsmask.f32 7950  ;;  %s1108_s13 = sshll.u32 %s1528_s12, 4  ;;  %s1109_s13 = int_to_ptr.vmem [resolvable:$true] %s1108_s13 }
  0x3b   :  { %v70_v13 = vld [vmem:[#allocation4 + $0x38] sm:$0xff]  ;;  %v73_v14 = vpack.c.bf16 %v1610_v11, %v67_v10  ;;  %v1379_v15 = vld [vmem:[#allocation7 + $0x60] sm:$0xff]   ;;  %v1380_v17 = vld [vmem:[#allocation7 + $0x68] sm:$0xff]   ;;  %p1498_p11 = scmp.lt.s32.totalorder %s1109_s13, %s1109_s13 }
  0x3c   :  { %75 = vst [vmem:[#allocation2] sm:$0xff] %v71_v8  ;;  %76 = vst [vmem:[#allocation2 + $0x8] sm:$0xff] %v72_v9  ;;  %v74_v16 = vpack.c.bf16 %v70_v13, %v1612_v12  ;;  %v1381_v22 = vld [vmem:[#allocation7 + $0x70] sm:$0xff]   ;;  %v585_v29 = vld [vmem:[#allocation3 + $0x8] sm:$0x10] }
  0x3d   :  { %1234 = vmatpush3.bf16.msra.mxu0 %v1376_v1  ;;  %77 = vst [vmem:[#allocation2 + $0x10] sm:$0xff] %v73_v14  ;;  %vm1620_vm3 = vmand %vm583_vm0, %vm83_vm1  ;;  %v1382_v30 = vld [vmem:[#allocation7 + $0x78] sm:$0xff]   ;;  %v1383_v41 = vld [vmem:[#allocation7] sm:$0xff]  }
  0x3e   :  { %1235 = vmatprep.subr.bf16.mxu0 %v1377_v2  ;;  %78 = vst [vmem:[#allocation2 + $0x18] sm:$0xff] %v74_v16  ;;  %v588_v33 = vld [vmem:[#allocation3 + $0x18] sm:$0x10]  ;;  %v586_v35 = vsel %vm1620_vm3, 0, %v585_v29  ;;  %v1384_v47 = vld [vmem:[#allocation7 + $0x8] sm:$0xff]   ;;  %v1385_v49 = vld [vmem:[#allocation7 + $0x10] sm:$0xff]  }
  0x3f   :  { %v589_v36 = vsel %vm1620_vm3, 0, %v588_v33  ;;  %587 = vst [vmem:[#allocation3 + $0x8] sm:$0x10] %v586_v35  ;;  %v1386_v50 = vld [vmem:[#allocation7 + $0x18] sm:$0xff]   ;;  %v1387_v51 = vld [vmem:[#allocation7 + $0x20] sm:$0xff]   ;;  %v1388_v52 = vld [vmem:[#allocation7 + $0x28] sm:$0xff]  }
  0x40   :  { %590 = vst [vmem:[#allocation3 + $0x18] sm:$0x10] %v589_v36  ;;  %v1389_v59 = vld [vmem:[#allocation7 + $0x30] sm:$0xff]   ;;  %v1390_v4 = vld [vmem:[#allocation7 + $0x38] sm:$0xff]   ;;  %vm576_vm7 = vmand %vm574_vm5, %vm575_vm6 }
  0x41   :  { %1236 = vmatpush3.bf16.msra.mxu0 %v1377_v2  ;;  %v1398_v36 = vld [vmem:[#allocation7 + $0xb8] sm:$0xff]  }
  0x42   :  { %1237 = vmatprep.subr.bf16.mxu0 %v1378_v3 }
  0x43   :  { %v1616_v18 = vld [vmem:[#allocation2] sm:$0xf0]  ;;  %v80_v19 = vld [vmem:[#allocation2 + $0x8] sm:$0xf] }
  0x44   :  { %v143_v20 = vrot.slane %v1616_v18, 4  ;;  %v79_v21 = vld [vmem:[#allocation2] sm:$0xf8]  ;;  %v144_v23 = vrot.slane %v80_v19, 4  ;;  %v93_v26 = vshrl.u32 %v80_v19, 16  ;;  %v96_v28 = vshll.u32 %v80_v19, 16 }
  0x45   :  { %1238 = vmatpush3.bf16.msra.mxu0 %v1378_v3  ;;  %v85_v24 = vshrl.u32 %v79_v21, 16  ;;  %v88_v25 = vshll.u32 %v79_v21, 16  ;;  %v1625_v32 = vld [vmem:[#allocation2 + $0x10] sm:$0xf0]  ;;  %v82_v34 = vld [vmem:[#allocation2 + $0x18] sm:$0xf] }
  0x46   :  { %1239 = vmatprep.subr.bf16.mxu0 %v1379_v15  ;;  %v145_v31 = vsel %vm142_vm2, %v143_v20, %v144_v23  ;;  %v95_v39 = vrot.slane %v93_v26, 3  ;;  %v98_v40 = vrot.slane %v96_v28, 4  ;;  %v146_v42 = vrot.slane %v1625_v32, 4  ;;  %v81_v53 = vld [vmem:[#allocation2 + $0x10] sm:$0xf8]  ;;  %v1392_v19 = vld [vmem:[#allocation7 + $0x88] sm:$0xff]  }
  0x47   :  { %1247 = vmatprep.mubr.bf16.mxu0 %v145_v31  ;;  %v87_v37 = vrot.slane %v85_v24, 3  ;;  %v90_v38 = vrot.slane %v88_v25, 4  ;;  %v147_v43 = vrot.slane %v82_v34, 4  ;;  %v362_v54 = vld [vmem:[#allocation2 + $0x8] sm:$0x1f]  ;;  %v102_v55 = vshrl.u32 %v81_v53, 16 }
  0x48   :  { %v99_v45 = vor.u32 %v98_v40, %v95_v39  ;;  %v105_v56 = vshll.u32 %v81_v53, 16  ;;  %v110_v57 = vshrl.u32 %v82_v34, 16  ;;  %v113_v58 = vshll.u32 %v82_v34, 16  ;;  %v1393_v21 = vld [vmem:[#allocation7 + $0x90] sm:$0xff]   ;;  %v1395_v23 = vld [vmem:[#allocation7 + $0xa0] sm:$0xff]   ;;  %v1396_v24 = vld [vmem:[#allocation7 + $0xa8] sm:$0xff]  }
  0x49   :  { %1240 = vmatpush3.bf16.msra.mxu0 %v1379_v15  ;;  %v91_v44 = vor.u32 %v90_v38, %v87_v37  ;;  %v148_v46 = vsel %vm142_vm2, %v146_v42, %v147_v43  ;;  %v366_v60 = vshrl.u32 %v1616_v18, 16  ;;  %v369_v61 = vshll.u32 %v1616_v18, 16  ;;  %v1391_v15 = vld [vmem:[#allocation7 + $0x80] sm:$0xff]   ;;  %v363_v25 = vld [vmem:[#allocation2 + $0x18] sm:$0x1f]  ;;  %v1400_v40 = vld [vmem:[#allocation9 + $0x48] sm:$0xff]  }
  0x4a   :  { %1241 = vmatprep.subr.bf16.mxu0 %v1380_v17  ;;  %v374_v62 = vshrl.u32 %v362_v54, 16  ;;  %v377_v63 = vshll.u32 %v362_v54, 16  ;;  %v104_v0 = vrot.slane %v102_v55, 3  ;;  %v107_v1 = vrot.slane %v105_v56, 4  ;;  %v1402_v42 = vld [vmem:[#allocation9 + $0x58] sm:$0xff]   ;;  %v1403_v43 = vld [vmem:[#allocation9 + $0x60] sm:$0xff]  }
  0x4b   :  { %v100_v48 = vsel %vm83_vm1, %v91_v44, %v99_v45  ;;  %v112_v2 = vrot.slane %v110_v57, 3  ;;  %v115_v3 = vrot.slane %v113_v58, 4  ;;  %v368_v7 = vrot.slane %v366_v60, 4  ;;  %v1404_v44 = vld [vmem:[#allocation9 + $0x68] sm:$0xff]   ;;  %v577_v45 = vld [vmem:[#allocation3] sm:$0x8] }
  0x4c   :  { %v371_v8 = vrot.slane %v369_v61, 5  ;;  %v376_v9 = vrot.slane %v374_v62, 4  ;;  %v379_v10 = vrot.slane %v377_v63, 5  ;;  %v108_v13 = vor.u32 %v107_v1, %v104_v0 }
  0x4d   :  { %1242 = vmatpush3.bf16.msra.mxu0 %v1380_v17  ;;  %v116_v14 = vor.u32 %v115_v3, %v112_v2  ;;  %v383_v26 = vshrl.u32 %v1625_v32, 16  ;;  %v386_v27 = vshll.u32 %v1625_v32, 16  ;;  %v391_v28 = vshrl.u32 %v363_v25, 16  ;;  %v1399_v32 = vld [vmem:[#allocation9 + $0x40] sm:$0xff]  }
  0x4e   :  { %1243 = vmatprep.subr.bf16.mxu0 %v1381_v22  ;;  %v372_v16 = vor.u32 %v371_v8, %v368_v7  ;;  %v380_v17 = vor.u32 %v379_v10, %v376_v9  ;;  %v394_v29 = vshll.u32 %v363_v25, 16  ;;  %1291 = vmatprep.subr.bf16.mxu1 %v1399_v32  ;;  %v551_v25 = vlaneseq }
  0x4f   :  { %v117_v18 = vsel %vm83_vm1, %v108_v13, %v116_v14  ;;  %v385_v31 = vrot.slane %v383_v26, 4  ;;  %v388_v33 = vrot.slane %v386_v27, 5  ;;  %v393_v34 = vrot.slane %v391_v28, 4  ;;  %1292 = vmatpush3.bf16.msra.mxu1 %v1399_v32  ;;  %v549_v27 = vld [vmem:[%s1696_s2] sm:$0x1] }
  0x50   :  { %v381_v20 = vsel %vm364_vm4, %v372_v16, %v380_v17  ;;  %v396_v35 = vrot.slane %v394_v29, 5  ;;  %1293 = vmatprep.subr.bf16.mxu1 %v1400_v40  ;;  %v1644_v26 = vshrl.u32 %v551_v25, 7 }
  0x51   :  { %1244 = vmatpush3.bf16.msra.mxu0 %v1381_v22  ;;  %v1394_v22 = vld [vmem:[#allocation7 + $0x98] sm:$0xff]   ;;  %v389_v37 = vor.u32 %v388_v33, %v385_v31  ;;  %v1145_v33 = vld [vmem:[%s1696_s2 + $0x1] ss:$0 sm:$0xff] }
  0x52   :  { %1245 = vmatprep.subr.bf16.mxu0 %v1382_v30  ;;  %v397_v38 = vor.u32 %v396_v35, %v393_v34  ;;  %v553_v28 = vsub.s32 0, %v1644_v26 }
  0x53   :  { %1294 = vmatpush3.bf16.msra.mxu1 %v1400_v40 }
  0x54   :  { %v398_v39 = vsel %vm364_vm4, %v389_v37, %v397_v38 }
  0x55   :  { %1246 = vmatpush3.bf16.msra.mxu0 %v1382_v30  ;;  %v1397_v30 = vld [vmem:[#allocation7 + $0xb0] sm:$0xff]  }
  0x56   :  { %1251 = vmatprep.subr.bf16.mxu0 %v1383_v41 }
  0x58   :  { %1248 = vmatmul.mubr.bf16.vlgmr.msra.gmra.mrb[0].mxu0 %v148_v46  ;;  %v1405_v46 = vld [vmem:[#allocation9 + $0x70] sm:$0xff]  }
  0x59   :  { %1252 = vmatpush3.bf16.msra.mxu0 %v1383_v41  ;;  %1267 = vmatprep.mubr.bf16.mxu0 %v100_v48  ;;  %v1401_v41 = vld [vmem:[#allocation9 + $0x50] sm:$0xff]  }
  0x5a   :  { %1253 = vmatprep.subr.bf16.mxu0 %v1384_v47  ;;  %1295 = vmatprep.subr.bf16.mxu1 %v1401_v41  ;;  %v580_v48 = vld [vmem:[#allocation3 + $0x10] sm:$0x8] }
  0x5b   :  { %1296 = vmatpush3.bf16.msra.mxu1 %v1401_v41 }
  0x5c   :  { %1297 = vmatprep.subr.bf16.mxu1 %v1402_v42 }
  0x5d   :  { %1254 = vmatpush3.bf16.msra.mxu0 %v1384_v47  ;;  %v578_v47 = vsel %vm576_vm7, 0, %v577_v45 }
  0x5e   :  { %1255 = vmatprep.subr.bf16.mxu0 %v1385_v49  ;;  %579 = vst [vmem:[#allocation3] sm:$0x8] %v578_v47 }
  0x5f   :  { %1298 = vmatpush3.bf16.msra.mxu1 %v1402_v42 }
  0x60   :  { %1299 = vmatprep.subr.bf16.mxu1 %v1403_v43 }
  0x61   :  { %1256 = vmatpush3.bf16.msra.mxu0 %v1385_v49  ;;  %v1406_v49 = vld [vmem:[#allocation9 + $0x78] sm:$0xff]  }
  0x62   :  { %1257 = vmatprep.subr.bf16.mxu0 %v1386_v50 }
  0x63   :  { %1300 = vmatpush3.bf16.msra.mxu1 %v1403_v43 }
  0x64   :  { %1301 = vmatprep.subr.bf16.mxu1 %v1404_v44 }
  0x65   :  { %1258 = vmatpush3.bf16.msra.mxu0 %v1386_v50  ;;  %v581_v50 = vsel %vm576_vm7, 0, %v580_v48 }
  0x66   :  { %1259 = vmatprep.subr.bf16.mxu0 %v1387_v51  ;;  %582 = vst [vmem:[#allocation3 + $0x10] sm:$0x8] %v581_v50 }
  0x67   :  { %1302 = vmatpush3.bf16.msra.mxu1 %v1404_v44 }
  0x68   :  { %1303 = vmatprep.subr.bf16.mxu1 %v1405_v46 }
  0x69   :  { %1260 = vmatpush3.bf16.msra.mxu0 %v1387_v51  ;;  %v1641_v51 = vld [vmem:[#allocation9] sm:$0xff]  }
  0x6a   :  { %1261 = vmatprep.subr.bf16.mxu0 %v1388_v52 }
  0x6b   :  { %1304 = vmatpush3.bf16.msra.mxu1 %v1405_v46 }
  0x6c   :  { %1305 = vmatprep.subr.bf16.mxu1 %v1406_v49 }
  0x6d   :  { %1262 = vmatpush3.bf16.msra.mxu0 %v1388_v52 }
  0x6e   :  { %1263 = vmatprep.subr.bf16.mxu0 %v1389_v59 }
  0x6f   :  { %1306 = vmatpush3.bf16.msra.mxu1 %v1406_v49 }
  0x70   :  { %1311 = vmatprep.subr.bf16.mxu1 %v1641_v51 }
  0x71   :  { %1264 = vmatpush3.bf16.msra.mxu0 %v1389_v59 }
  0x72   :  { %1265 = vmatprep.subr.bf16.mxu0 %v1390_v4 }
  0x75   :  { %1266 = vmatpush3.bf16.msra.mxu0 %v1390_v4 }
  0x76   :  { %1271 = vmatprep.subr.bf16.mxu0 %v1391_v15 }
  0x78   :  { %1268 = vmatmul.mubr.bf16.vlgmr.msra.gmra.mrb[0].mxu0 %v117_v18 }
  0x79   :  { %1272 = vmatpush3.bf16.msra.mxu0 %v1391_v15  ;;  %1287 = vmatprep.mubr.bf16.mxu0 %v381_v20 }
  0x7a   :  { %1273 = vmatprep.subr.bf16.mxu0 %v1392_v19 }
  0x7d   :  { %1274 = vmatpush3.bf16.msra.mxu0 %v1392_v19 }
  0x7e   :  { %1275 = vmatprep.subr.bf16.mxu0 %v1393_v21 }
  0x81   :  { %1276 = vmatpush3.bf16.msra.mxu0 %v1393_v21 }
  0x82   :  { %1277 = vmatprep.subr.bf16.mxu0 %v1394_v22 }
  0x85   :  { %1278 = vmatpush3.bf16.msra.mxu0 %v1394_v22 }
  0x86   :  { %1279 = vmatprep.subr.bf16.mxu0 %v1395_v23 }
  0x89   :  { %1280 = vmatpush3.bf16.msra.mxu0 %v1395_v23 }
  0x8a   :  { %1281 = vmatprep.subr.bf16.mxu0 %v1396_v24 }
  0x8d   :  { %1282 = vmatpush3.bf16.msra.mxu0 %v1396_v24 }
  0x8e   :  { %1283 = vmatprep.subr.bf16.mxu0 %v1397_v30 }
  0x91   :  { %1284 = vmatpush3.bf16.msra.mxu0 %v1397_v30 }
  0x92   :  { %1285 = vmatprep.subr.bf16.mxu0 %v1398_v36 }
  0x95   :  { %1286 = vmatpush3.bf16.msra.mxu0 %v1398_v36 }
  0x98   :  { %1288 = vmatmul.mubr.bf16.vlgmr.msra.gmra.mrb[0].mxu0 %v398_v39 }
 0x16b   :  { %v1289_v52 = vpop.f32.mrb[0].mxu0 }
 0x16c   :  { %v500_v53 = vpop.f32.mrb[1].mxu0 }
 0x16d   :  { %v1290_v54 = vpop.f32.mrb[2].mxu0 }
 0x16e   :  { %v503_v55 = vpop.f32.mrb[3].mxu0 }
 0x16f   :  { %v519_v56 = vadd.f32 %v503_v55, %v500_v53 }
 0x171   :  { %v520_v57 = vadd.f32 %v1289_v52, %v519_v56 }
 0x173   :  { %v521_v58 = vadd.f32 %v1290_v54, %v520_v57 }
 0x175   :  { %v522_v59 = vrot.slane %v521_v58, 4 }
 0x177   :  { %v523_v60 = vadd.f32 %v522_v59, %v521_v58 }
 0x179   :  { %v524_v61 = vrot.slane %v523_v60, 2 }
 0x17b   :  { %v525_v62 = vadd.f32 %v524_v61, %v523_v60 }
 0x17d   :  { %v526_v63 = vrot.slane %v525_v62, 1 }
 0x17f   :  { %v527_v0 = vadd.f32 %v526_v63, %v525_v62  ;;  %v1408_v62 = vld [vmem:[#allocation9 + $0x8] sm:$0xff]  }
 0x181   :  { %v528_v1 = vmul.f32 0.03125, %v527_v0 }
 0x183   :  { %v529_v2 = vsub.f32 %v500_v53, %v528_v1  ;;  %v530_v3 = vsub.f32 %v503_v55, %v528_v1  ;;  %v531_v4 = vsub.f32 %v1289_v52, %v528_v1  ;;  %v532_v7 = vsub.f32 %v1290_v54, %v528_v1 }
 0x185   :  { %v533_v8 = vmul.f32 %v529_v2, %v529_v2  ;;  %v534_v9 = vmul.f32 %v530_v3, %v530_v3  ;;  %v535_v10 = vmul.f32 %v531_v4, %v531_v4  ;;  %v536_v14 = vmul.f32 %v532_v7, %v532_v7 }
 0x187   :  { %v537_v13 = vadd.f32 %v534_v9, %v533_v8 }
 0x189   :  { %v538_v15 = vadd.f32 %v537_v13, %v535_v10  ;;  %v1409_v10 = vld [vmem:[#allocation9 + $0x10] sm:$0xff]  }
 0x18b   :  { %v539_v16 = vadd.f32 %v538_v15, %v536_v14  ;;  %v1410_v14 = vld [vmem:[#allocation9 + $0x18] sm:$0xff]   ;;  %v1411_v15 = vld [vmem:[#allocation9 + $0x20] sm:$0xff]  }
 0x18d   :  { %v540_v17 = vrot.slane %v539_v16, 4 }
 0x18f   :  { %v541_v18 = vadd.f32 %v540_v17, %v539_v16  ;;  %v1412_v16 = vld [vmem:[#allocation9 + $0x28] sm:$0xff]  }
 0x191   :  { %v542_v19 = vrot.slane %v541_v18, 2 }
 0x193   :  { %v543_v20 = vadd.f32 %v542_v19, %v541_v18 }
 0x195   :  { %v544_v21 = vrot.slane %v543_v20, 1 }
 0x197   :  { %v545_v22 = vadd.f32 %v544_v21, %v543_v20 }
 0x199   :  { %v546_v23 = vmul.f32 0.03125, %v545_v22 }
 0x19b   :  { %v547_v24 = vadd.f32 1e-05, %v546_v23 }
 0x19d   :  { %1423 = vrsqrt.f32 %v547_v24 }
 0x1a7   :  { %v1424_v29 = vpop.eup %1423 }
 0x1a8   :  { %v550_v30 = vmul.f32 %v1424_v29, %v549_v27  ;;  %v1414_v29 = vld [vmem:[#allocation9 + $0x38] sm:$0xff]  }
 0x1aa   :  { %v554_v31 = vrot.slane %v550_v30, %v553_v28 }
 0x1ac   :  { %v555_v34 = vmul.f32 %v554_v31, %v529_v2  ;;  %v556_v35 = vmul.f32 %v554_v31, %v530_v3  ;;  %v557_v36 = vmul.f32 %v554_v31, %v531_v4  ;;  %v558_v37 = vmul.f32 %v554_v31, %v532_v7 }
 0x1ae   :  { %v564_v38 = vadd.f32 %v1145_v33, %v555_v34  ;;  %v565_v39 = vadd.f32 %v1145_v33, %v556_v35  ;;  %v566_v32 = vadd.f32 %v1145_v33, %v557_v36  ;;  %v567_v40 = vadd.f32 %v1145_v33, %v558_v37 }
 0x1b0   :  { %v568_v41 = vmax.f32 %v564_v38, 0.0  ;;  %v569_v42 = vmax.f32 %v565_v39, 0.0  ;;  %v570_v43 = vmax.f32 %v566_v32, 0.0  ;;  %v571_v44 = vmax.f32 %v567_v40, 0.0  ;;  %v1415_v39 = vld [vmem:[#allocation9 + $0x80] sm:$0xff]  }
 0x1b2   :  { %v572_v45 = vpack.c.bf16 %v569_v42, %v568_v41  ;;  %v573_v46 = vpack.c.bf16 %v571_v44, %v570_v43  ;;  %v1416_v43 = vld [vmem:[#allocation9 + $0x88] sm:$0xff]  }
 0x1b4   :  { %v593_v47 = vrot.slane %v572_v45, 4  ;;  %v594_v48 = vrot.slane %v573_v46, 4  ;;  %v1417_v46 = vld [vmem:[#allocation9 + $0x90] sm:$0xff]  }
 0x1b6   :  { %597 = vst [vmem:[#allocation3 + $0x8] ss:$-4 sps:$4 sm:$0xff] %v593_v47   ;;  %599 = vst [vmem:[#allocation3 + $0x18] ss:$-4 sps:$4 sm:$0xff] %v594_v48   ;;  %v1418_v47 = vld [vmem:[#allocation9 + $0x98] sm:$0xff]   ;;  %v1419_v48 = vld [vmem:[#allocation9 + $0xa0] sm:$0xff]  }
 0x1bd   :  { %v602_v49 = vld [vmem:[#allocation3 + $0x8] sm:$0xf]  ;;  %v657_v50 = vld [vmem:[#allocation3] sm:$0xf0]  ;;  %v604_v52 = vld [vmem:[#allocation3 + $0x18] sm:$0xf] }
 0x1be   :  { %v663_v53 = vrot.slane %v657_v50, 4  ;;  %v664_v54 = vrot.slane %v602_v49, 4  ;;  %v1655_v55 = vld [vmem:[#allocation3 + $0x10] sm:$0xf0]  ;;  %v667_v56 = vrot.slane %v604_v52, 4  ;;  %v614_v57 = vshrl.u32 %v602_v49, 16 }
 0x1bf   :  { %v666_v58 = vrot.slane %v1655_v55, 4  ;;  %v601_v59 = vld [vmem:[#allocation3] sm:$0xf8]  ;;  %v617_v60 = vshll.u32 %v602_v49, 16  ;;  %v603_v17 = vld [vmem:[#allocation3 + $0x10] sm:$0xf8] }
 0x1c0   :  { %v665_v61 = vsel %vm142_vm2, %v663_v53, %v664_v54  ;;  %v606_v63 = vshrl.u32 %v601_v59, 16  ;;  %v609_v0 = vshll.u32 %v601_v59, 16  ;;  %v616_v1 = vrot.slane %v614_v57, 3  ;;  %v882_v18 = vld [vmem:[#allocation3 + $0x8] sm:$0x1f] }
 0x1c1   :  { %1307 = vmatprep.mubr.bf16.mxu1 %v665_v61  ;;  %v668_v2 = vsel %vm142_vm2, %v666_v58, %v667_v56  ;;  %v619_v3 = vrot.slane %v617_v60, 4  ;;  %v623_v19 = vshrl.u32 %v603_v17, 16  ;;  %v626_v20 = vshll.u32 %v603_v17, 16  ;;  %v1420_v49 = vld [vmem:[#allocation9 + $0xa8] sm:$0xff]   ;;  %v1422_v58 = vld [vmem:[#allocation9 + $0xb8] sm:$0xff]  }
 0x1c2   :  { %1308 = vmatmul.mubr.bf16.vlgmr.msra.gmra.mrb[0].mxu1 %v668_v2  ;;  %v608_v4 = vrot.slane %v606_v63, 3  ;;  %v611_v7 = vrot.slane %v609_v0, 4  ;;  %v631_v21 = vshrl.u32 %v604_v52, 16  ;;  %v634_v22 = vshll.u32 %v604_v52, 16  ;;  %v1421_v52 = vld [vmem:[#allocation9 + $0xb0] sm:$0xff]  }
 0x1c3   :  { %1312 = vmatpush3.bf16.msra.mxu1 %v1641_v51  ;;  %v620_v8 = vor.u32 %v619_v3, %v616_v1  ;;  %v1413_v51 = vld [vmem:[#allocation9 + $0x30] sm:$0xff]   ;;  %v885_v23 = vshrl.u32 %v657_v50, 16  ;;  %v888_v24 = vshll.u32 %v657_v50, 16  ;;  %v893_v25 = vshrl.u32 %v882_v18, 16  ;;  %v883_v50 = vld [vmem:[#allocation3 + $0x18] sm:$0x1f] }
 0x1c4   :  { %1313 = vmatprep.subr.bf16.mxu1 %v1408_v62  ;;  %v612_v9 = vor.u32 %v611_v7, %v608_v4  ;;  %v896_v27 = vshll.u32 %v882_v18, 16  ;;  %v625_v30 = vrot.slane %v623_v19, 3  ;;  %v628_v31 = vrot.slane %v626_v20, 4 }
 0x1c5   :  { %v633_v33 = vrot.slane %v631_v21, 3  ;;  %v636_v34 = vrot.slane %v634_v22, 4  ;;  %v887_v35 = vrot.slane %v885_v23, 4  ;;  %v890_v36 = vrot.slane %v888_v24, 5 }
 0x1c6   :  { %v621_v13 = vsel %vm83_vm1, %v612_v9, %v620_v8  ;;  %v895_v37 = vrot.slane %v893_v25, 4  ;;  %v898_v38 = vrot.slane %v896_v27, 5  ;;  %v629_v32 = vor.u32 %v628_v31, %v625_v30 }
 0x1c7   :  { %1327 = vmatprep.mubr.bf16.mxu1 %v621_v13  ;;  %1314 = vmatpush3.bf16.msra.mxu1 %v1408_v62  ;;  %v637_v40 = vor.u32 %v636_v34, %v633_v33  ;;  %v891_v41 = vor.u32 %v890_v36, %v887_v35  ;;  %v902_v53 = vshrl.u32 %v1655_v55, 16  ;;  %v905_v54 = vshll.u32 %v1655_v55, 16 }
 0x1c8   :  { %1315 = vmatprep.subr.bf16.mxu1 %v1409_v10  ;;  %v899_v42 = vor.u32 %v898_v38, %v895_v37  ;;  %v910_v56 = vshrl.u32 %v883_v50, 16  ;;  %v913_v57 = vshll.u32 %v883_v50, 16 }
 0x1c9   :  { %v638_v44 = vsel %vm83_vm1, %v629_v32, %v637_v40  ;;  %v904_v59 = vrot.slane %v902_v53, 4  ;;  %v907_v60 = vrot.slane %v905_v54, 5  ;;  %v1068_v32 = vld [vmem:[%s1698_s4] sm:$0x1] }
 0x1ca   :  { %v900_v45 = vsel %vm364_vm4, %v891_v41, %v899_v42  ;;  %v912_v61 = vrot.slane %v910_v56, 4  ;;  %v915_v62 = vrot.slane %v913_v57, 5 }
 0x1cb   :  { %1316 = vmatpush3.bf16.msra.mxu1 %v1409_v10  ;;  %v908_v63 = vor.u32 %v907_v60, %v904_v59 }
 0x1cc   :  { %1317 = vmatprep.subr.bf16.mxu1 %v1410_v14  ;;  %v916_v0 = vor.u32 %v915_v62, %v912_v61 }
 0x1ce   :  { %v917_v1 = vsel %vm364_vm4, %v908_v63, %v916_v0 }
 0x1cf   :  { %1318 = vmatpush3.bf16.msra.mxu1 %v1410_v14 }
 0x1d0   :  { %1319 = vmatprep.subr.bf16.mxu1 %v1411_v15 }
 0x1d3   :  { %1320 = vmatpush3.bf16.msra.mxu1 %v1411_v15 }
 0x1d4   :  { %1321 = vmatprep.subr.bf16.mxu1 %v1412_v16 }
 0x1d7   :  { %1322 = vmatpush3.bf16.msra.mxu1 %v1412_v16 }
 0x1d8   :  { %1323 = vmatprep.subr.bf16.mxu1 %v1413_v51 }
 0x1db   :  { %1324 = vmatpush3.bf16.msra.mxu1 %v1413_v51 }
 0x1dc   :  { %1325 = vmatprep.subr.bf16.mxu1 %v1414_v29 }
 0x1df   :  { %1326 = vmatpush3.bf16.msra.mxu1 %v1414_v29 }
 0x1e0   :  { %1331 = vmatprep.subr.bf16.mxu1 %v1415_v39 }
 0x1e2   :  { %1328 = vmatmul.mubr.bf16.vlgmr.msra.gmra.mrb[0].mxu1 %v638_v44 }
 0x1e3   :  { %1332 = vmatpush3.bf16.msra.mxu1 %v1415_v39  ;;  %1347 = vmatprep.mubr.bf16.mxu1 %v900_v45 }
 0x1e4   :  { %1333 = vmatprep.subr.bf16.mxu1 %v1416_v43 }
 0x1e7   :  { %1334 = vmatpush3.bf16.msra.mxu1 %v1416_v43  ;;  %v1170_v43 = vld [vmem:[%s1698_s4 + $0x1] ss:$0 sm:$0xff]  ;;  %s1493_s4 = scalar_lea.vmem %s1109_s13, 512 }
 0x1e8   :  { %1335 = vmatprep.subr.bf16.mxu1 %v1417_v46  ;;  %p1494_p10 = scmp.ne.s32.totalorder %s1109_s13, %s1493_s4  ;;  %p1499_p12 = scmp.lt.s32.totalorder %s1493_s4, %s1493_s4 }
 0x1ea   :  { %p1500_p13 = por %p1499_p12, %p1498_p11 }
 0x1eb   :  { %1336 = vmatpush3.bf16.msra.mxu1 %v1417_v46 }
 0x1ec   :  { %1337 = vmatprep.subr.bf16.mxu1 %v1418_v47  ;;  %p1501_p0 = pnand %p1500_p13, %p1494_p10 }
 0x1ef   :  { %1338 = vmatpush3.bf16.msra.mxu1 %v1418_v47 }
 0x1f0   :  { %1339 = vmatprep.subr.bf16.mxu1 %v1419_v48 }
 0x1f3   :  { %1340 = vmatpush3.bf16.msra.mxu1 %v1419_v48 }
 0x1f4   :  { %1341 = vmatprep.subr.bf16.mxu1 %v1420_v49 }
 0x1f7   :  { %1342 = vmatpush3.bf16.msra.mxu1 %v1420_v49 }
 0x1f8   :  { %1343 = vmatprep.subr.bf16.mxu1 %v1421_v52 }
 0x1fb   :  { %1344 = vmatpush3.bf16.msra.mxu1 %v1421_v52 }
 0x1fc   :  { %1345 = vmatprep.subr.bf16.mxu1 %v1422_v58 }
 0x1ff   :  { %1346 = vmatpush3.bf16.msra.mxu1 %v1422_v58 }
 0x202   :  { %1348 = vmatmul.mubr.bf16.vlgmr.msra.gmra.mrb[0].mxu1 %v917_v1 }
 0x2d5   :  { %v1349_v2 = vpop.f32.mrb[0].mxu1 }
 0x2d6   :  { %v1019_v3 = vpop.f32.mrb[1].mxu1 }
 0x2d7   :  { %v1350_v55 = vpop.f32.mrb[2].mxu1 }
 0x2d8   :  { %v1022_v4 = vpop.f32.mrb[3].mxu1 }
 0x2d9   :  { %v1038_v7 = vadd.f32 %v1022_v4, %v1019_v3 }
 0x2db   :  { %v1039_v8 = vadd.f32 %v1349_v2, %v1038_v7 }
 0x2dd   :  { %v1040_v9 = vadd.f32 %v1350_v55, %v1039_v8 }
 0x2df   :  { %v1041_v10 = vrot.slane %v1040_v9, 4 }
 0x2e1   :  { %v1042_v13 = vadd.f32 %v1041_v10, %v1040_v9 }
 0x2e3   :  { %v1043_v14 = vrot.slane %v1042_v13, 2 }
 0x2e5   :  { %v1044_v15 = vadd.f32 %v1043_v14, %v1042_v13 }
 0x2e7   :  { %v1045_v16 = vrot.slane %v1044_v15, 1 }
 0x2e9   :  { %v1046_v17 = vadd.f32 %v1045_v16, %v1044_v15 }
 0x2eb   :  { %v1047_v18 = vmul.f32 0.03125, %v1046_v17 }
 0x2ed   :  { %v1048_v51 = vsub.f32 %v1019_v3, %v1047_v18  ;;  %v1049_v19 = vsub.f32 %v1022_v4, %v1047_v18  ;;  %v1050_v20 = vsub.f32 %v1349_v2, %v1047_v18  ;;  %v1051_v21 = vsub.f32 %v1350_v55, %v1047_v18 }
 0x2ef   :  { %v1052_v22 = vmul.f32 %v1048_v51, %v1048_v51  ;;  %v1053_v23 = vmul.f32 %v1049_v19, %v1049_v19  ;;  %v1054_v24 = vmul.f32 %v1050_v20, %v1050_v20  ;;  %v1055_v27 = vmul.f32 %v1051_v21, %v1051_v21 }
 0x2f1   :  { %v1056_v25 = vadd.f32 %v1053_v23, %v1052_v22 }
 0x2f3   :  { %v1057_v29 = vadd.f32 %v1056_v25, %v1054_v24 }
 0x2f5   :  { %v1058_v30 = vadd.f32 %v1057_v29, %v1055_v27 }
 0x2f7   :  { %v1059_v31 = vrot.slane %v1058_v30, 4 }
 0x2f9   :  { %v1060_v33 = vadd.f32 %v1059_v31, %v1058_v30 }
 0x2fb   :  { %v1061_v34 = vrot.slane %v1060_v33, 2 }
 0x2fd   :  { %v1062_v35 = vadd.f32 %v1061_v34, %v1060_v33 }
 0x2ff   :  { %v1063_v36 = vrot.slane %v1062_v35, 1 }
 0x301   :  { %v1064_v37 = vadd.f32 %v1063_v36, %v1062_v35 }
 0x303   :  { %v1065_v38 = vmul.f32 0.03125, %v1064_v37 }
 0x305   :  { %v1066_v39 = vadd.f32 1e-05, %v1065_v38 }
 0x307   :  { %1425 = vrsqrt.f32 %v1066_v39 }
 0x311   :  { %v1426_v40 = vpop.eup %1425 }
 0x312   :  { %v1069_v41 = vmul.f32 %v1426_v40, %v1068_v32 }
 0x314   :  { %v1073_v42 = vrot.slane %v1069_v41, %v553_v28 }
 0x316   :  { %v1074_v44 = vmul.f32 %v1073_v42, %v1048_v51  ;;  %v1075_v45 = vmul.f32 %v1073_v42, %v1049_v19  ;;  %v1076_v46 = vmul.f32 %v1073_v42, %v1050_v20  ;;  %v1077_v47 = vmul.f32 %v1073_v42, %v1051_v21 }
 0x318   :  { %v1083_v48 = vadd.f32 %v1170_v43, %v1074_v44  ;;  %v1084_v49 = vadd.f32 %v1170_v43, %v1075_v45  ;;  %v1085_v50 = vadd.f32 %v1170_v43, %v1076_v46  ;;  %v1086_v52 = vadd.f32 %v1170_v43, %v1077_v47 }
 0x31a   :  { %v1092_v53 = vadd.f32 %v1084_v49, %v1606_v6  ;;  %v1091_v54 = vadd.f32 %v1083_v48, %v1604_v5  ;;  %v1093_v26 = vadd.f32 %v1085_v50, %v1610_v11  ;;  %v1094_v28 = vadd.f32 %v1086_v52, %v1612_v12 }
 0x31c   :  { %v1096_v56 = vmax.f32 %v1092_v53, 0.0  ;;  %v1095_v57 = vmax.f32 %v1091_v54, 0.0  ;;  %v1097_v58 = vmax.f32 %v1093_v26, 0.0  ;;  %v1098_v59 = vmax.f32 %v1094_v28, 0.0 }
 0x31e   :  { %1100 = vst [vmem:[#allocation10 + $0x8] sm:$0xff] %v1096_v56  ;;  %1099 = vst [vmem:[#allocation10] sm:$0xff] %v1095_v57 }
 0x31f   :  { %1101 = vst [vmem:[#allocation10 + $0x10] sm:$0xff] %v1097_v58  ;;  %1102 = vst [vmem:[#allocation10 + $0x18] sm:$0xff] %v1098_v59 }
 0x320   :  { %1504 = shalt.err (!%p1501_p0)
}
 0x321   :  { %s1505_s16 = scalar_lea.hbm %s1699_s5, 512 }
 0x322   :  { %p1506_p1 = scmp.ne.s32.totalorder %s1699_s5, %s1505_s16  ;;  %p1509_p2 = scmp.lt.u32.totalorder %s1505_s16, %s1699_s5 }
 0x324   :  { %p1511_p3 = pnand %p1509_p2, %p1506_p1 }
 0x326   :  { %1514 = shalt.err (!%p1511_p3)
}
 0x327   :  { %1114 = dma.vmem_to_hbm [thread:$0]  %s1109_s13, 512, %s1699_s5, [#allocation6], %s1525_s1, %s1525_s1, %s1526_s17  }
 0x328   :  { %1519 = dma.done.wait [#allocation6], 512  }
 0x329   :  { %1520 = vsyncadd [#allocation6], 4294966784 }
 0x32a   :  { %1118 = vsyncpa [#allocation5], 1 }
 0x32b   :  { %1119 = vsyncpa [#allocation8], 1 }
 0x32c   :  { %1120 = vsyncpa [#allocation6], 1 }

</bundles_post_ra>
